<compile_context>
chip_gen: v6e
topology: v6e:2x2x1
jax: 0.10.0
libtpu: 0.0.40
codegen_flags: <defaults>
</compile_context>

<pallas_src>
import functools

import jax
import jax.numpy as jnp
from jax.experimental import pallas as pl
from jax.experimental.pallas import tpu as pltpu

_LANE = 128
_SUBLANE = 8
# Streamed-enc VMEM budget (double-buffered block + live per-step intermediates).
# Sized so the kernel stays well under v7x's 64 MiB VMEM / 32 MiB scoped default,
# with large headroom on v5e/v6e (128 MiB).
_VMEM_TILE_BUDGET = 20 * 1024 * 1024


def _round_up(x, m):
    return (x + m - 1) // m * m


def _select_tiles(L, B, H, method):
    """Pick (TB, TL): batch tile and L tile for the streaming grid."""
    h_lanes = _round_up(H, _LANE)                    # H < 128 pads to 128 lanes in VMEM
    copies = 2 + (3 if method == 'concat' else 1)    # 2 enc buffers + live intermediates

    if B <= 128:
        # >= 2 "parallel" batch blocks whenever possible so both v7x TensorCores
        # get work (no effect on single-TC v5e/v6e).
        TB = min(_round_up(max(1, (B + 1) // 2), _SUBLANE), _round_up(B, _SUBLANE))
    else:
        TB = 128
        # Large-batch / short-sequence: wider lane-multiple tiles amortize the
        # ~0.35us per-grid-step overhead while keeping >=2 parallel blocks.
        while (TB < 512 and B >= 4 * TB
               and copies * (2 * TB) * h_lanes * 4 * _SUBLANE <= _VMEM_TILE_BUDGET):
            TB *= 2

    tl = _VMEM_TILE_BUDGET // (copies * TB * h_lanes * 4)
    tl = max(_SUBLANE, tl - tl % _SUBLANE)
    TL = min(tl, _round_up(L, _SUBLANE))
    return TB, TL


def _vmem_limit_bytes(L, L_pad, TL, TB, H, method):
    """Explicit scoped-VMEM request (v5e default is only 16 MiB)."""
    h_lanes = _round_up(H, _LANE)
    copies = 2 + (3 if method == 'concat' else 1)
    est = (copies * TL * TB * h_lanes * 4            # streamed enc + per-step intermediates
           + 2 * L_pad * _round_up(TB, _LANE) * 4    # (L_pad, TB) score scratch (+ slack)
           + 2 * L * _round_up(TB, _LANE) * 4        # output block (double-buffered)
           + 8 * TB * h_lanes * 4                    # hid block, hid' scratch, misc
           + 6 * H * h_lanes * 4)                    # weight / bias / v blocks
    return int(min(64 * 1024 * 1024, max(32 * 1024 * 1024, est * 5 // 4)))


def _finalize(L, score_ref, out_ref):
    """Column-wise softmax over L of the accumulated (L_pad, TB) score tile."""
    s = score_ref[...]                                            # (L_pad, TB) f32
    if score_ref.shape[0] > L:
        # Rows >= L hold garbage from the ragged final L block: mask to -inf
        # (softmax-invariant; exp(-inf) == 0 in the denominator).
        row = jax.lax.broadcasted_iota(jnp.int32, s.shape, 0)
        s = jnp.where(row < L, s, -jnp.inf)
    m = jnp.max(s, axis=0, keepdims=True)
    e = jnp.exp(s - m)
    p = e * (1.0 / jnp.sum(e, axis=0, keepdims=True))
    out_ref[0] = p[:L, :].astype(out_ref.dtype)                   # (L, TB)


def _dot_kernel(L, hid_ref, enc_ref, out_ref, score_ref):
    l = pl.program_id(1)
    TL = enc_ref.shape[0]
    # TODO(synk): on v7x, if a bundle dump shows the XLU lane-reduce saturating
    # before HBM, switch to an MXU matvec: (hid*enc).reshape(TL*TB, H) @ ones((H,1)).
    scores = jnp.sum(hid_ref[...][None, :, :] * enc_ref[...], axis=-1)      # (TL, TB)
    score_ref[pl.ds(pl.multiple_of(l * TL, _SUBLANE), TL), :] = scores

    @pl.when(l == pl.num_programs(1) - 1)
    def _():
        _finalize(L, score_ref, out_ref)


def _general_kernel(L, hid_ref, enc_ref, w_ref, out_ref, score_ref, hidp_ref):
    l = pl.program_id(1)
    TL = enc_ref.shape[0]

    @pl.when(l == 0)
    def _():
        # Reassociated score: (hid @ W) . enc, computed once per batch block.
        # The Linear bias adds a per-batch constant to every score, which is
        # softmax-invariant -> dropped.
        hidp_ref[...] = jnp.dot(hid_ref[...], w_ref[...],
                                preferred_element_type=jnp.float32)

    scores = jnp.sum(hidp_ref[...][None, :, :] * enc_ref[...], axis=-1)     # (TL, TB)
    score_ref[pl.ds(pl.multiple_of(l * TL, _SUBLANE), TL), :] = scores

    @pl.when(l == pl.num_programs(1) - 1)
    def _():
        _finalize(L, score_ref, out_ref)


def _concat_kernel(L, hid_ref, enc_ref, w1t_ref, w2t_ref, b_ref, v_ref,
                   out_ref, score_ref, hidp_ref):
    l = pl.program_id(1)
    TL, TB, H = enc_ref.shape

    @pl.when(l == 0)
    def _():
        hidp_ref[...] = (jnp.dot(hid_ref[...], w1t_ref[...],
                                 preferred_element_type=jnp.float32) + b_ref[...])

    # One (TL*TB, H) @ (H, H) MXU matmul per L chunk keeps live intermediates
    # bounded by TL (no full (L*TB, H) blow-up in VMEM / vregs).
    enc_flat = enc_ref[...].reshape(TL * TB, H)
    e_e = jnp.dot(enc_flat, w2t_ref[...], preferred_element_type=jnp.float32)
    energy = jnp.tanh(e_e.reshape(TL, TB, H) + hidp_ref[...][None, :, :])
    scores = jnp.sum(v_ref[...] * energy, axis=-1)                          # (TL, TB)
    score_ref[pl.ds(pl.multiple_of(l * TL, _SUBLANE), TL), :] = scores

    @pl.when(l == pl.num_programs(1) - 1)
    def _():
        _finalize(L, score_ref, out_ref)


class AttnPallas:
    """Pallas-TPU port of the PyTorch `Attn` (Luong attention) module."""

    def __init__(self, method, hidden_size, key):
        if method not in ('dot', 'general', 'concat'):
            raise ValueError(method, 'is not an appropriate attention method.')
        self.method = method
        self.hidden_size = hidden_size
        H = hidden_size
        k0, k1, k2 = jax.random.split(key, 3)
        if method == 'general':
            bound = 1.0 / (H ** 0.5)                 # nn.Linear(H, H) init bound
            self.w = jax.random.uniform(k0, (H, H), jnp.float32, -bound, bound)
            self.b = jax.random.uniform(k1, (1, H), jnp.float32, -bound, bound)
        elif method == 'concat':
            bound = 1.0 / ((2 * H) ** 0.5)           # nn.Linear(2H, H) init bound
            self.w = jax.random.uniform(k0, (H, 2 * H), jnp.float32, -bound, bound)
            self.b = jax.random.uniform(k1, (1, H), jnp.float32, -bound, bound)
            self.v = jax.random.normal(k2, (1, H), jnp.float32)

    def __call__(self, hidden, encoder_outputs):
        # hidden: (1, B, H); encoder_outputs: (L, B, H)  -- PyTorch axis order.
        L, B, H = encoder_outputs.shape
        hid2d = hidden.reshape(B, H)                 # tiny; enc is never padded/relaid out

        TB, TL = _select_tiles(L, B, H, self.method)
        nb, nl = pl.cdiv(B, TB), pl.cdiv(L, TL)
        L_pad = nl * TL
        # TODO(synk): for extremely long L the (L_pad, TB) score scratch should be
        # replaced by an online softmax so VMEM stays bounded in L.

        hid_spec = pl.BlockSpec((TB, H), lambda b, l: (b, 0))
        enc_spec = pl.BlockSpec((TL, TB, H), lambda b, l: (l, b, 0))
        # Output block index is constant along the L axis -> resident accumulator,
        # written back once per batch block after the softmax on the last L step.
        out_spec = pl.BlockSpec((1, L, TB), lambda b, l: (b, 0, 0))
        out_shape = jax.ShapeDtypeStruct((nb, L, TB), jnp.float32)

        def const(shape):
            return pl.BlockSpec(shape, lambda b, l: (0, 0))

        cp = pltpu.CompilerParams(
            dimension_semantics=("parallel", "arbitrary"),
            vmem_limit_bytes=_vmem_limit_bytes(L, L_pad, TL, TB, H, self.method))
        score_scratch = pltpu.VMEM((L_pad, TB), jnp.float32)

        if self.method == 'dot':
            res = pl.pallas_call(
                functools.partial(_dot_kernel, L),
                out_shape=out_shape,
                grid_spec=pltpu.PrefetchScalarGridSpec(
                    num_scalar_prefetch=0, grid=(nb, nl),
                    in_specs=[hid_spec, enc_spec],
                    out_specs=out_spec,
                    scratch_shapes=[score_scratch]),
                compiler_params=cp)(hid2d, encoder_outputs)
        elif self.method == 'general':
            res = pl.pallas_call(
                functools.partial(_general_kernel, L),
                out_shape=out_shape,
                grid_spec=pltpu.PrefetchScalarGridSpec(
                    num_scalar_prefetch=0, grid=(nb, nl),
                    in_specs=[hid_spec, enc_spec, const((H, H))],
                    out_specs=out_spec,
                    scratch_shapes=[score_scratch,
                                    pltpu.VMEM((TB, H), jnp.float32)]),
                compiler_params=cp)(hid2d, encoder_outputs, self.w)
        else:  # concat
            w1t = self.w[:, :H].T                    # (H, H) hidden half of W
            w2t = self.w[:, H:].T                    # (H, H) encoder half of W
            res = pl.pallas_call(
                functools.partial(_concat_kernel, L),
                out_shape=out_shape,
                grid_spec=pltpu.PrefetchScalarGridSpec(
                    num_scalar_prefetch=0, grid=(nb, nl),
                    in_specs=[hid_spec, enc_spec, const((H, H)), const((H, H)),
                              const((1, H)), const((1, H))],
                    out_specs=out_spec,
                    scratch_shapes=[score_scratch,
                                    pltpu.VMEM((TB, H), jnp.float32)]),
                compiler_params=cp)(hid2d, encoder_outputs, w1t, w2t, self.b, self.v)

        # res: (nb, L, TB) per-block attention weights (softmax over L applied).
        # Only this small (~B*L) result is relaid out by XLA; the big enc operand
        # is never padded or transposed in HBM.  Padded batch columns (ragged
        # final block) are sliced off here.
        attn = res.transpose(0, 2, 1).reshape(nb * TB, L)[:B]     # (B, L)
        return attn[:, None, :]                                    # (B, 1, L)


def attn_reference(module, hidden, encoder_outputs):
    """Pure-JAX reference matching the PyTorch forward exactly."""
    if module.method == 'dot':
        scores = jnp.sum(hidden * encoder_outputs, axis=2)                  # (L, B)
    elif module.method == 'general':
        energy = encoder_outputs @ module.w.T + module.b[0]
        scores = jnp.sum(hidden * energy, axis=2)
    else:
        hid_e = jnp.broadcast_to(hidden, encoder_outputs.shape)
        cat = jnp.concatenate([hid_e, encoder_outputs], axis=2)
        energy = jnp.tanh(cat @ module.w.T + module.b[0])
        scores = jnp.sum(module.v[0] * energy, axis=2)
    return jax.nn.softmax(scores.T, axis=1)[:, None, :]                     # (B, 1, L)


if __name__ == "__main__":
    B, L, H = 2, 8, 32
    key = jax.random.PRNGKey(0)
    k_hid, k_enc, k_par = jax.random.split(key, 3)
    hidden = jax.random.normal(k_hid, (1, B, H), jnp.float32)               # (1, B, H)
    encoder_outputs = jax.random.normal(k_enc, (L, B, H), jnp.float32)      # (L, B, H)

    ok = True
    for method in ('dot', 'general', 'concat'):
        mod = AttnPallas(method, H, k_par)
        out = jax.block_until_ready(mod(hidden, encoder_outputs))
        ref = attn_reference(mod, hidden, encoder_outputs)
        assert out.shape == (B, 1, L), (method, out.shape)
        if not jnp.allclose(out, ref, atol=1e-5, rtol=1e-5):
            ok = False
            print(f"MISMATCH in method={method}",
                  float(jnp.max(jnp.abs(out - ref))))

    if ok:
        print("KERNEL_OK")
</pallas_src>

<mosaic_0001>
module attributes {stable_mosaic.version = 11 : i64} {
  func.func @_dot_kernel(%arg0: i32, %arg1: i32, %arg2: memref<8x32xf32, #tpu.memory_space<vmem>>, %arg3: memref<8x8x32xf32, #tpu.memory_space<vmem>>, %arg4: memref<1x8x8xf32, #tpu.memory_space<vmem>>, %arg5: memref<8x8xf32, #tpu.memory_space<vmem>>) attributes {dimension_semantics = [#tpu.dimension_semantics<parallel>, #tpu.dimension_semantics<arbitrary>], iteration_bounds = array<i64: 1, 1>, scalar_prefetch = 0 : i64, scratch_operands = 1 : i64, tpu.core_type = #tpu.core_type<tc>, window_params = [{transform_indices = @transform_0, window_bounds = array<i64: 8, 32>}, {transform_indices = @transform_1, window_bounds = array<i64: 8, 8, 32>}, {transform_indices = @transform_2, window_bounds = array<i64: 1, 8, 8>}]} {
    %c0 = arith.constant 0 : index
    %c0_0 = arith.constant 0 : index
    %0 = vector.load %arg2[%c0, %c0_0] : memref<8x32xf32, #tpu.memory_space<vmem>>, vector<8x32xf32>
    %1 = vector.shape_cast %0 : vector<8x32xf32> to vector<1x8x32xf32>
    %c0_1 = arith.constant 0 : index
    %c0_2 = arith.constant 0 : index
    %c0_3 = arith.constant 0 : index
    %2 = vector.load %arg3[%c0_1, %c0_2, %c0_3] : memref<8x8x32xf32, #tpu.memory_space<vmem>>, vector<8x8x32xf32>
    %3 = vector.broadcast %1 : vector<1x8x32xf32> to vector<8x8x32xf32>
    %4 = arith.mulf %3, %2 : vector<8x8x32xf32>
    %cst = arith.constant dense<0.000000e+00> : vector<8x8xf32>
    %5 = vector.multi_reduction <add>, %4, %cst [2] : vector<8x8x32xf32> to vector<8x8xf32>
    %c8_i32 = arith.constant 8 : i32
    %6 = arith.muli %arg1, %c8_i32 : i32
    %7 = tpu.assume_multiple %6, 8 : i32
    %8 = arith.index_cast %7 : i32 to index
    %c0_4 = arith.constant 0 : index
    %9 = vector.load %arg5[%8, %c0_4] : memref<8x8xf32, #tpu.memory_space<vmem>>, vector<8x8xf32>
    tpu.vector_store %arg5[%8, %c0_4], %5 {strides = array<i32>} : memref<8x8xf32, #tpu.memory_space<vmem>>, vector<8x8xf32>,
    %c0_i32 = arith.constant 0 : i32
    %10 = arith.cmpi eq, %arg1, %c0_i32 : i32
    %11 = arith.extui %10 : i1 to i32
    %c0_i32_5 = arith.constant 0 : i32
    %12 = arith.cmpi ne, %11, %c0_i32_5 : i32
    scf.if %12 {
      %c0_6 = arith.constant 0 : index
      %c0_7 = arith.constant 0 : index
      %13 = vector.load %arg5[%c0_6, %c0_7] : memref<8x8xf32, #tpu.memory_space<vmem>>, vector<8x8xf32>
      %cst_8 = arith.constant dense<0xFF800000> : vector<8xf32>
      %14 = vector.multi_reduction <maximumf>, %13, %cst_8 [0] : vector<8x8xf32> to vector<8xf32>
      %15 = vector.shape_cast %14 : vector<8xf32> to vector<1x8xf32>
      %16 = vector.broadcast %15 : vector<1x8xf32> to vector<8x8xf32>
      %17 = arith.subf %13, %16 : vector<8x8xf32>
      %18 = math.exp %17 : vector<8x8xf32>
      %cst_9 = arith.constant dense<0.000000e+00> : vector<8xf32>
      %19 = vector.multi_reduction <add>, %18, %cst_9 [0] : vector<8x8xf32> to vector<8xf32>
      %20 = vector.shape_cast %19 : vector<8xf32> to vector<1x8xf32>
      %cst_10 = arith.constant 1.000000e+00 : f32
      %21 = vector.broadcast %cst_10 : f32 to vector<1x8xf32>
      %22 = arith.divf %21, %20 : vector<1x8xf32>
      %23 = vector.broadcast %22 : vector<1x8xf32> to vector<8x8xf32>
      %24 = arith.mulf %18, %23 : vector<8x8xf32>
      %c0_11 = arith.constant 0 : index
      %c0_12 = arith.constant 0 : index
      %c0_13 = arith.constant 0 : index
      %25 = vector.load %arg4[%c0_11, %c0_12, %c0_13] : memref<1x8x8xf32, #tpu.memory_space<vmem>>, vector<1x8x8xf32>
      %26 = vector.shape_cast %25 : vector<1x8x8xf32> to vector<8x8xf32>
      %27 = vector.shape_cast %24 : vector<8x8xf32> to vector<1x8x8xf32>
      tpu.vector_store %arg4[%c0_11, %c0_12, %c0_13], %27 {strides = array<i32>} : memref<1x8x8xf32, #tpu.memory_space<vmem>>, vector<1x8x8xf32>,
    } else {
    }
    return
  }
  func.func @transform_0(%arg0: i32, %arg1: i32) -> (i32, i32) {
    %c0_i32 = arith.constant 0 : i32
    %c0_i32_0 = arith.constant 0 : i32
    return %arg0, %c0_i32 : i32, i32
  }
  func.func @transform_1(%arg0: i32, %arg1: i32) -> (i32, i32, i32) {
    %c0_i32 = arith.constant 0 : i32
    %c0_i32_0 = arith.constant 0 : i32
    return %arg1, %arg0, %c0_i32 : i32, i32, i32
  }
  func.func @transform_2(%arg0: i32, %arg1: i32) -> (i32, i32, i32) {
    %c0_i32 = arith.constant 0 : i32
    %c0_i32_0 = arith.constant 0 : i32
    %c0_i32_1 = arith.constant 0 : i32
    return %arg0, %c0_i32, %c0_i32_0 : i32, i32, i32
  }
}

</mosaic_0001>

<bundles_post_ra>
// kernel: tpu_custom_call.1
= control target key start
LH: loop header
LB: loop body
LE: loop exit
PB: predicated region body
PF: predicated region fallthrough
CT: control target
= control target key end

     0   :  { %7 = vsyncpa [#allocation4], 0  ;;  %s320_s0 = inlined_call_operand.hbm [shape: f32[2,32], index: 0, kind: input, shape index: {}]   ;;  %s321_s1 = inlined_call_operand.hbm [shape: f32[8,2,32], index: 1, kind: input, shape index: {}]   ;;  %s322_s2 = inlined_call_operand.hbm [shape: f32[1,8,8], index: 2, kind: output, shape index: {}]  }
   0x1   :  { %8 = vsyncpa [#allocation7], 0 }
   0x2   :  { %9 = vsyncpa [#allocation5], 0 }
   0x3   :  { %14 = vsyncadd [#allocation4], 96  ;;  %s273_s9 = smov [#allocation3]  }
   0x4   :  { %s15_s10 = sshll.u32 %s273_s9, 4  ;;  %s16_s10 = int_to_ptr.vmem [resolvable:$true] %s15_s10 }
   0x5   :  { %s235_s11 = scalar_lea.vmem %s16_s10, 32  ;;  %s239_s12 = scalar_lea.vmem %s16_s10, 128 }
   0x6   :  { %p236_p0 = scmp.ne.s32.totalorder %s16_s10, %s235_s11  ;;  %p240_p1 = scmp.lt.s32.totalorder %s16_s10, %s16_s10 }
   0x7   :  { %p241_p2 = scmp.lt.s32.totalorder %s239_s12, %s235_s11 }
   0x9   :  { %p242_p3 = por %p241_p2, %p240_p1 }
   0xb   :  { %p243_p4 = pnand %p242_p3, %p236_p0 }
   0xd   :  { %246 = shalt.err (!%p243_p4)
}
   0xe   :  { %s274_s13 = smov 32   ;;  %s275_s14 = smov 2  }
   0xf   :  { %21 = dma.hbm_to_vmem [thread:$0]  %s320_s0, 32, %s16_s10, [#allocation4], %s274_s13, %s274_s13, %s275_s14  }
  0x10   :  { %26 = vsyncadd [#allocation7], 768  ;;  %s31_s17 = sld [smem:[#allocation0]]   ;;  %s276_s18 = smov [#allocation6]  }
  0x11   :  { %s39_s19 = sshll.u32 %s276_s18, 4  ;;  %s277_s20 = smov 32   ;;  %s40_s19 = int_to_ptr.vmem [resolvable:$true] %s39_s19 }
  0x12   :  { %46 = sst [smem:[#allocation10]] %s277_s20  ;;  %s278_s21 = smov 128  }
  0x13   :  { %48 = sst [smem:[#allocation10 + $0x1]] %s278_s21  ;;  %s279_s22 = smov 1  }
  0x14   :  { %50 = sst [smem:[#allocation10 + $0x2]] %s279_s22  ;;  %s280_s25 = smov 2  }
  0x15   :  { %52 = sst [smem:[#allocation10 + $0x3]] %s277_s20  ;;  %s281_s26 = smov [#allocation7]  }
  0x16   :  { %s210_s23 = sshll.u32 %s31_s17, 26  ;;  %54 = sst [smem:[#allocation10 + $0x4]] %s277_s20 }
  0x17   :  { %s211_s24 = sadd.s32 134217728, %s210_s23  ;;  %56 = sst [smem:[#allocation10 + $0x5]] %s280_s25 }
  0x18   :  { %s282_s27 = smov 131072  }
  0x19   :  { %58 = dma.general %s321_s1, 256, %s40_s19, %s281_s26, %s282_s27, [#allocation10], %s211_s24, 0  }
  0x1a   :  { %267 = dma.done.wait [#allocation4], 128  }
  0x1b   :  { %268 = vsyncadd [#allocation4], 4294967168 }
  0x1c   :  { %269 = dma.done.wait [#allocation7], 1024  }
  0x1d   :  { %270 = vsyncadd [#allocation7], 4294966272  ;;  %v65_v0 = vld [vmem:[#allocation3] sm:$0xff]  ;;  %v66_v1 = vld [vmem:[#allocation6] sm:$0xff]  ;;  %vm82_vm0 = vcmask 261120   ;;  %v116_v25 = vlaneseq  ;;  %vm150_vm1 = vcmask 1041409  }
  0x1e   :  { %v68_v2 = vld [vmem:[#allocation6 + $0x10] sm:$0xff]  ;;  %v74_v3 = vmul.f32 %v66_v1, %v65_v0  ;;  %v67_v5 = vld [vmem:[#allocation6 + $0x8] sm:$0xff]  ;;  %v69_v6 = vld [vmem:[#allocation6 + $0x18] sm:$0xff]  ;;  %vm152_vm2 = vcmask 1042434   ;;  %vm154_vm3 = vcmask 1043459   ;;  %vm156_vm4 = vcmask 1044484  }
  0x1f   :  { %v76_v4 = vmul.f32 %v68_v2, %v65_v0  ;;  %v75_v7 = vmul.f32 %v67_v5, %v65_v0  ;;  %v77_v8 = vmul.f32 %v69_v6, %v65_v0  ;;  %v70_v9 = vld [vmem:[#allocation6 + $0x20] sm:$0xff]  ;;  %v71_v10 = vld [vmem:[#allocation6 + $0x28] sm:$0xff]  ;;  %v72_v17 = vld [vmem:[#allocation6 + $0x30] sm:$0xff]  ;;  %v117_v26 = vand.u32 127, %v116_v25  ;;  %s283_s1 = smov [#allocation8]  }
  0x20   :  { %v83_v11 = vsel %vm82_vm0, %v74_v3, 0.0  ;;  %v78_v15 = vmul.f32 %v70_v9, %v65_v0  ;;  %v79_v16 = vmul.f32 %v71_v10, %v65_v0  ;;  %v73_v18 = vld [vmem:[#allocation6 + $0x38] sm:$0xff]  ;;  %v80_v21 = vmul.f32 %v72_v17, %v65_v0  ;;  %s200_s29 = sshll.u32 %s283_s1, 4  ;;  %s201_s29 = int_to_ptr.vmem [resolvable:$true] %s200_s29 }
  0x21   :  { %v89_v12 = vsel %vm82_vm0, %v76_v4, 0.0  ;;  %84 = vadd.xlane.f32.xlu0 %v83_v11  ;;  %v86_v13 = vsel %vm82_vm0, %v75_v7, 0.0  ;;  %v92_v14 = vsel %vm82_vm0, %v77_v8, 0.0  ;;  %v81_v22 = vmul.f32 %v73_v18, %v65_v0  ;;  %s247_s30 = scalar_lea.vmem %s201_s29, 128  ;;  %p252_p6 = scmp.lt.s32.totalorder %s201_s29, %s201_s29 }
  0x22   :  { %90 = vadd.xlane.f32.xlu1 %v89_v12  ;;  %v95_v19 = vsel %vm82_vm0, %v78_v15, 0.0  ;;  %v98_v20 = vsel %vm82_vm0, %v79_v16, 0.0  ;;  %v101_v23 = vsel %vm82_vm0, %v80_v21, 0.0  ;;  %v119_v27 = vshrl.u32 %v116_v25, 7  ;;  %p248_p5 = scmp.ne.s32.totalorder %s201_s29, %s247_s30  ;;  %p253_p7 = scmp.lt.s32.totalorder %s247_s30, %s247_s30 }
  0x23   :  { %v104_v24 = vsel %vm82_vm0, %v81_v22, 0.0  ;;  %vm158_vm5 = vcmask 1045509   ;;  %vm160_vm6 = vcmask 1046534   ;;  %vm162_vm7 = vcmask 1047559  }
  0x24   :  { %v120_v30 = vsub.s32 %v117_v26, %v119_v27  ;;  %vm166_vm8 = vcmask 64512   ;;  %p254_p8 = por %p253_p7, %p252_p6 }
  0x25   :  { %87 = vadd.xlane.f32.xlu0 %v86_v13 }
  0x26   :  { %93 = vadd.xlane.f32.xlu1 %v92_v14  ;;  %p255_p9 = pnand %p254_p8, %p248_p5 }
  0x29   :  { %96 = vadd.xlane.f32.xlu0 %v95_v19 }
  0x2a   :  { %99 = vadd.xlane.f32.xlu1 %v98_v20 }
  0x2d   :  { %102 = vadd.xlane.f32.xlu0 %v101_v23 }
  0x2e   :  { %105 = vadd.xlane.f32.xlu1 %v104_v24 }
  0xaa   :  { %v85_v28 = vpop.xlane.xlu0 %84 }
  0xab   :  { %v91_v29 = vpop.xlane.xlu1 %90  ;;  %v121_v33 = vrot.slane %v85_v28, %v120_v30 }
  0xac   :  { %v129_v36 = vrot.slane %v91_v29, %v120_v30 }
  0xae   :  { %v88_v31 = vpop.xlane.xlu0 %87 }
  0xaf   :  { %v94_v32 = vpop.xlane.xlu1 %93  ;;  %v125_v34 = vrot.slane %v88_v31, %v120_v30 }
  0xb0   :  { %v133_v35 = vrot.slane %v94_v32, %v120_v30 }
  0xb1   :  { %v151_v37 = vsel %vm150_vm1, %v125_v34, %v121_v33 }
  0xb2   :  { %v153_v38 = vsel %vm152_vm2, %v129_v36, %v151_v37  ;;  %v97_v39 = vpop.xlane.xlu0 %96 }
  0xb3   :  { %v100_v40 = vpop.xlane.xlu1 %99  ;;  %v155_v41 = vsel %vm154_vm3, %v133_v35, %v153_v38  ;;  %v137_v42 = vrot.slane %v97_v39, %v120_v30 }
  0xb4   :  { %v141_v43 = vrot.slane %v100_v40, %v120_v30 }
  0xb5   :  { %v157_v44 = vsel %vm156_vm4, %v137_v42, %v155_v41 }
  0xb6   :  { %v103_v45 = vpop.xlane.xlu0 %102  ;;  %v159_v49 = vsel %vm158_vm5, %v141_v43, %v157_v44 }
  0xb7   :  { %v106_v46 = vpop.xlane.xlu1 %105  ;;  %v145_v47 = vrot.slane %v103_v45, %v120_v30 }
  0xb8   :  { %v149_v48 = vrot.slane %v106_v46, %v120_v30 }
  0xb9   :  { %v161_v50 = vsel %vm160_vm6, %v145_v47, %v159_v49 }
  0xba   :  { %v163_v51 = vsel %vm162_vm7, %v149_v48, %v161_v50 }
  0xbb   :  { %167 = vst.msk [vmem:[#allocation2] sm:$0xff] %vm166_vm8, %v163_v51 }
  0xc2   :  { %v172_v52 = vld [vmem:[#allocation2] sm:$0xff] }
  0xc3   :  { %v173_v53 = vsel %vm166_vm8, %v172_v52, -inf }
  0xc4   :  { %v174_v54 = vrot.slane %v173_v53, 4 }
  0xc6   :  { %v175_v55 = vmax.f32 %v173_v53, %v174_v54 }
  0xc8   :  { %v176_v56 = vrot.slane %v175_v55, 2 }
  0xca   :  { %v177_v57 = vmax.f32 %v175_v55, %v176_v56 }
  0xcc   :  { %v178_v58 = vrot.slane %v177_v57, 1 }
  0xce   :  { %v179_v59 = vmax.f32 %v177_v57, %v178_v58 }
  0xd0   :  { %v180_v60 = vsub.f32 %v172_v52, %v179_v59 }
  0xd2   :  { %v181_v61 = vmul.f32 1.442695, %v180_v60 }
  0xd4   :  { %223 = vpow2.f32 %v181_v61 }
  0xe1   :  { %v224_v62 = vpop.eup %223 }
  0xe2   :  { %v183_v63 = vsel %vm166_vm8, %v224_v62, 0.0 }
  0xe3   :  { %v184_v0 = vrot.slane %v183_v63, 4 }
  0xe5   :  { %v185_v1 = vadd.f32 %v184_v0, %v183_v63 }
  0xe7   :  { %v186_v2 = vrot.slane %v185_v1, 2 }
  0xe9   :  { %v187_v3 = vadd.f32 %v186_v2, %v185_v1 }
  0xeb   :  { %v188_v4 = vrot.slane %v187_v3, 1 }
  0xed   :  { %v189_v5 = vadd.f32 %v188_v4, %v187_v3 }
  0xef   :  { %225 = vrcp.f32 %v189_v5 }
  0xfc   :  { %v226_v6 = vpop.eup %225 }
  0xfd   :  { %v192_v7 = vmul.f32 %v226_v6, %v224_v62 }
  0xff   :  { %193 = vst.msk [vmem:[#allocation8] sm:$0xff] %vm166_vm8, %v192_v7 }
 0x100   :  { %258 = shalt.err (!%p255_p9)
}
 0x101   :  { %203 = dma.vmem_to_hbm [thread:$0]  %s201_s29, 128, %s322_s2, [#allocation5]  }
 0x102   :  { %271 = dma.done.wait [#allocation5], 128  }
 0x103   :  { %272 = vsyncadd [#allocation5], 4294967168 }
 0x104   :  { %207 = vsyncpa [#allocation4], 1 }
 0x105   :  { %208 = vsyncpa [#allocation7], 1 }
 0x106   :  { %209 = vsyncpa [#allocation5], 1 }

</bundles_post_ra>
